<compile_context>
chip_gen: v7x
topology: tpu7x:2x2x1
jax: 0.10.0
libtpu: 0.0.40
codegen_flags: <defaults>
</compile_context>

<pallas_src>
import jax
import jax.numpy as jnp
from jax.experimental import pallas as pl
from jax.experimental.pallas import tpu as pltpu


def _gru_step_kernel(h_ref, x_ref, w_hzr_ref, w_x3_ref, w_th_ref, out_ref):
    H = h_ref.shape[-1]

    h = h_ref[...]
    x = x_ref[...]

    # x-dependent pre-activations for (z, r, t), fused into one lane-dense
    # [TB, 3H] matmul. Independent of h/r -> issued first, off the serial chain.
    x_gates = jnp.dot(x, w_x3_ref[...], preferred_element_type=jnp.float32)

    # h-dependent parts of z and r fused into one [TB, 2H] matmul.
    h_zr = jnp.dot(h, w_hzr_ref[...], preferred_element_type=jnp.float32)

    h_f32 = h.astype(jnp.float32)
    z = jax.nn.sigmoid(h_zr[:, :H] + x_gates[:, :H])
    r = jax.nn.sigmoid(h_zr[:, H:] + x_gates[:, H:2 * H])

    # Only (r*h) @ W_th has to wait for r. Feed the MXU in the weight dtype
    # (bf16 fast path if weights are bf16), keep elementwise math in f32.
    rh = (r * h_f32).astype(w_th_ref.dtype)
    t = jnp.tanh(
        jnp.dot(rh, w_th_ref[...], preferred_element_type=jnp.float32)
        + x_gates[:, 2 * H:]
    )

    h_new = (1.0 - z) * h_f32 + z * t
    out_ref[...] = h_new.astype(out_ref.dtype)


def prepare_gru_weights(w_z, w_r, w_t, hidden_size, dtype=None):
    """One-time weight prep (call OUTSIDE any timestep loop).

    Takes PyTorch nn.Linear weights of shape [H, H+I] and returns:
      w_hzr: [H, 2H]  = [Wz_h.T | Wr_h.T]
      w_x3 : [I, 3H]  = [Wz_x.T | Wr_x.T | Wt_x.T]
      w_th : [H, H]   = Wt_h.T
    """
    H = hidden_size
    w_hzr = jnp.concatenate([w_z[:, :H].T, w_r[:, :H].T], axis=1)
    w_x3 = jnp.concatenate([w_z[:, H:].T, w_r[:, H:].T, w_t[:, H:].T], axis=1)
    w_th = w_t[:, :H].T
    if dtype is not None:
        w_hzr, w_x3, w_th = (a.astype(dtype) for a in (w_hzr, w_x3, w_th))
    return w_hzr, w_x3, w_th


def _pick_batch_tile(B):
    for tb in (512, 256, 128, 64, 32, 16, 8):
        if B % tb == 0:
            return tb
    return B  # small / odd batch: single full-batch block


def gru_step(h_state, inp, w_hzr, w_x3, w_th):
    """h_state: [B, H], inp: [B, I], weights pre-fused via prepare_gru_weights()."""
    B, H = h_state.shape
    I = inp.shape[-1]
    assert w_hzr.shape == (H, 2 * H)
    assert w_x3.shape == (I, 3 * H)
    assert w_th.shape == (H, H)

    TB = _pick_batch_tile(B)
    grid = (B // TB,)

    # TODO(synk): for very large H*I (f32 weights > ~24 MiB) on v7x, add a second
    # grid axis over the H output dim and stream weight tiles instead of keeping
    # the full fused weights VMEM-resident.
    return pl.pallas_call(
        _gru_step_kernel,
        out_shape=jax.ShapeDtypeStruct((B, H), h_state.dtype),
        grid_spec=pltpu.PrefetchScalarGridSpec(
            num_scalar_prefetch=0,
            grid=grid,
            in_specs=[
                pl.BlockSpec((TB, H), lambda i: (i, 0)),        # h tile (pipelined)
                pl.BlockSpec((TB, I), lambda i: (i, 0)),        # x tile (pipelined)
                pl.BlockSpec((H, 2 * H), lambda i: (0, 0)),     # weights: VMEM-resident
                pl.BlockSpec((I, 3 * H), lambda i: (0, 0)),
                pl.BlockSpec((H, H), lambda i: (0, 0)),
            ],
            out_specs=pl.BlockSpec((TB, H), lambda i: (i, 0)),
        ),
        input_output_aliases={0: 0},  # h' overwrites h_state buffer
        compiler_params=pltpu.CompilerParams(
            dimension_semantics=("parallel",),   # batch axis across TCs (v7x)
            vmem_limit_bytes=64 * 1024 * 1024,
        ),
    )(h_state, inp, w_hzr, w_x3, w_th)


def gru_step_ref(h_state, inp, w_z, w_r, w_t):
    """Pure-JAX reference matching the PyTorch forward exactly."""
    cat_hx = jnp.concatenate([h_state, inp], axis=-1)
    z = jax.nn.sigmoid(cat_hx @ w_z.T)
    r = jax.nn.sigmoid(cat_hx @ w_r.T)
    cat_rhx = jnp.concatenate([r * h_state, inp], axis=-1)
    t = jnp.tanh(cat_rhx @ w_t.T)
    return (1.0 - z) * h_state + z * t


if __name__ == "__main__":
    B, H, I = 8, 32, 48  # batch, hidden_size, input_size

    key = jax.random.PRNGKey(0)
    k_h, k_x, k_wz, k_wr, k_wt = jax.random.split(key, 5)

    h_state = jax.random.normal(k_h, (B, H), dtype=jnp.float32)
    inp = jax.random.normal(k_x, (B, I), dtype=jnp.float32)

    # Deterministic nn.Linear-style init: U(-1/sqrt(fan_in), 1/sqrt(fan_in)).
    bound = 1.0 / jnp.sqrt(jnp.float32(H + I))
    w_z = jax.random.uniform(k_wz, (H, H + I), jnp.float32, -bound, bound)
    w_r = jax.random.uniform(k_wr, (H, H + I), jnp.float32, -bound, bound)
    w_t = jax.random.uniform(k_wt, (H, H + I), jnp.float32, -bound, bound)

    # Reference first (kernel output aliases h_state's buffer by request).
    ref = gru_step_ref(h_state, inp, w_z, w_r, w_t)

    # One-time weight prep (outside any timestep loop), then the fused step.
    w_hzr, w_x3, w_th = prepare_gru_weights(w_z, w_r, w_t, H)
    out = jax.block_until_ready(gru_step(h_state, inp, w_hzr, w_x3, w_th))

    assert out.shape == (B, H), out.shape
    assert jnp.allclose(out, ref, atol=1e-5, rtol=1e-5), "mismatch vs reference"
    print("KERNEL_OK")
</pallas_src>

<mosaic_0001>
module attributes {stable_mosaic.version = 11 : i64} {
  func.func @_gru_step_kernel(%arg0: i32, %arg1: memref<8x32xf32, #tpu.memory_space<vmem>>, %arg2: memref<8x48xf32, #tpu.memory_space<vmem>>, %arg3: memref<32x64xf32, #tpu.memory_space<vmem>>, %arg4: memref<48x96xf32, #tpu.memory_space<vmem>>, %arg5: memref<32x32xf32, #tpu.memory_space<vmem>>, %arg6: memref<8x32xf32, #tpu.memory_space<vmem>>) attributes {dimension_semantics = [#tpu.dimension_semantics<parallel>], iteration_bounds = array<i64: 1>, scalar_prefetch = 0 : i64, scratch_operands = 0 : i64, tpu.core_type = #tpu.core_type<tc>, window_params = [{transform_indices = @transform_0, window_bounds = array<i64: 8, 32>}, {transform_indices = @transform_1, window_bounds = array<i64: 8, 48>}, {pipeline_mode = #tpu.pipeline_mode<synchronous>, transform_indices = @transform_2, window_bounds = array<i64: 32, 64>}, {pipeline_mode = #tpu.pipeline_mode<synchronous>, transform_indices = @transform_3, window_bounds = array<i64: 48, 96>}, {pipeline_mode = #tpu.pipeline_mode<synchronous>, transform_indices = @transform_4, window_bounds = array<i64: 32, 32>}, {transform_indices = @transform_5, window_bounds = array<i64: 8, 32>}]} {
    %c0 = arith.constant 0 : index
    %c0_0 = arith.constant 0 : index
    %0 = vector.load %arg1[%c0, %c0_0] : memref<8x32xf32, #tpu.memory_space<vmem>>, vector<8x32xf32>
    %c0_1 = arith.constant 0 : index
    %c0_2 = arith.constant 0 : index
    %1 = vector.load %arg2[%c0_1, %c0_2] : memref<8x48xf32, #tpu.memory_space<vmem>>, vector<8x48xf32>
    %c0_3 = arith.constant 0 : index
    %c0_4 = arith.constant 0 : index
    %2 = vector.load %arg4[%c0_3, %c0_4] : memref<48x96xf32, #tpu.memory_space<vmem>>, vector<48x96xf32>
    %cst = arith.constant dense<0.000000e+00> : vector<8x96xf32>
    %3 = tpu.matmul %1, %2, %cst {dimension_numbers = #tpu.dot_dimension_numbers<[1], [0], [0], [1], [0, 0, 1, 1], [], []>} : vector<8x48xf32>, vector<48x96xf32>, vector<8x96xf32> -> vector<8x96xf32>
    %c0_5 = arith.constant 0 : index
    %c0_6 = arith.constant 0 : index
    %4 = vector.load %arg3[%c0_5, %c0_6] : memref<32x64xf32, #tpu.memory_space<vmem>>, vector<32x64xf32>
    %cst_7 = arith.constant dense<0.000000e+00> : vector<8x64xf32>
    %5 = tpu.matmul %0, %4, %cst_7 {dimension_numbers = #tpu.dot_dimension_numbers<[1], [0], [0], [1], [0, 0, 1, 1], [], []>} : vector<8x32xf32>, vector<32x64xf32>, vector<8x64xf32> -> vector<8x64xf32>
    %6 = vector.extract_strided_slice %5 {offsets = [0, 0], sizes = [8, 32], strides = [1, 1]} : vector<8x64xf32> to vector<8x32xf32>
    %7 = vector.extract_strided_slice %3 {offsets = [0, 0], sizes = [8, 32], strides = [1, 1]} : vector<8x96xf32> to vector<8x32xf32>
    %8 = arith.addf %6, %7 : vector<8x32xf32>
    %9 = arith.negf %8 : vector<8x32xf32>
    %10 = math.exp %9 : vector<8x32xf32>
    %cst_8 = arith.constant 1.000000e+00 : f32
    %11 = vector.broadcast %cst_8 : f32 to vector<8x32xf32>
    %12 = arith.addf %11, %10 : vector<8x32xf32>
    %13 = arith.divf %11, %12 : vector<8x32xf32>
    %14 = vector.extract_strided_slice %5 {offsets = [0, 32], sizes = [8, 32], strides = [1, 1]} : vector<8x64xf32> to vector<8x32xf32>
    %15 = vector.extract_strided_slice %3 {offsets = [0, 32], sizes = [8, 32], strides = [1, 1]} : vector<8x96xf32> to vector<8x32xf32>
    %16 = arith.addf %14, %15 : vector<8x32xf32>
    %17 = arith.negf %16 : vector<8x32xf32>
    %18 = math.exp %17 : vector<8x32xf32>
    %cst_9 = arith.constant 1.000000e+00 : f32
    %19 = vector.broadcast %cst_9 : f32 to vector<8x32xf32>
    %20 = arith.addf %19, %18 : vector<8x32xf32>
    %21 = arith.divf %19, %20 : vector<8x32xf32>
    %22 = arith.mulf %21, %0 : vector<8x32xf32>
    %c0_10 = arith.constant 0 : index
    %c0_11 = arith.constant 0 : index
    %23 = vector.load %arg5[%c0_10, %c0_11] : memref<32x32xf32, #tpu.memory_space<vmem>>, vector<32x32xf32>
    %cst_12 = arith.constant dense<0.000000e+00> : vector<8x32xf32>
    %24 = tpu.matmul %22, %23, %cst_12 {dimension_numbers = #tpu.dot_dimension_numbers<[1], [0], [0], [1], [0, 0, 1, 1], [], []>} : vector<8x32xf32>, vector<32x32xf32>, vector<8x32xf32> -> vector<8x32xf32>
    %25 = vector.extract_strided_slice %3 {offsets = [0, 64], sizes = [8, 32], strides = [1, 1]} : vector<8x96xf32> to vector<8x32xf32>
    %26 = arith.addf %24, %25 : vector<8x32xf32>
    %27 = math.tanh %26 : vector<8x32xf32>
    %cst_13 = arith.constant 1.000000e+00 : f32
    %28 = vector.broadcast %cst_13 : f32 to vector<8x32xf32>
    %29 = arith.subf %28, %13 : vector<8x32xf32>
    %30 = arith.mulf %29, %0 : vector<8x32xf32>
    %31 = arith.mulf %13, %27 : vector<8x32xf32>
    %32 = arith.addf %30, %31 : vector<8x32xf32>
    %c0_14 = arith.constant 0 : index
    %c0_15 = arith.constant 0 : index
    %33 = vector.load %arg6[%c0_14, %c0_15] : memref<8x32xf32, #tpu.memory_space<vmem>>, vector<8x32xf32>
    tpu.vector_store %arg6[%c0_14, %c0_15], %32 {strides = array<i32>} : memref<8x32xf32, #tpu.memory_space<vmem>>, vector<8x32xf32>,
    return
  }
  func.func @transform_0(%arg0: i32) -> (i32, i32) {
    %c0_i32 = arith.constant 0 : i32
    %c0_i32_0 = arith.constant 0 : i32
    return %arg0, %c0_i32 : i32, i32
  }
  func.func @transform_1(%arg0: i32) -> (i32, i32) {
    %c0_i32 = arith.constant 0 : i32
    %c0_i32_0 = arith.constant 0 : i32
    return %arg0, %c0_i32 : i32, i32
  }
  func.func @transform_2(%arg0: i32) -> (i32, i32) {
    %c0_i32 = arith.constant 0 : i32
    %c0_i32_0 = arith.constant 0 : i32
    %c0_i32_1 = arith.constant 0 : i32
    return %c0_i32, %c0_i32_0 : i32, i32
  }
  func.func @transform_3(%arg0: i32) -> (i32, i32) {
    %c0_i32 = arith.constant 0 : i32
    %c0_i32_0 = arith.constant 0 : i32
    %c0_i32_1 = arith.constant 0 : i32
    return %c0_i32, %c0_i32_0 : i32, i32
  }
  func.func @transform_4(%arg0: i32) -> (i32, i32) {
    %c0_i32 = arith.constant 0 : i32
    %c0_i32_0 = arith.constant 0 : i32
    %c0_i32_1 = arith.constant 0 : i32
    return %c0_i32, %c0_i32_0 : i32, i32
  }
  func.func @transform_5(%arg0: i32) -> (i32, i32) {
    %c0_i32 = arith.constant 0 : i32
    %c0_i32_0 = arith.constant 0 : i32
    return %arg0, %c0_i32 : i32, i32
  }
}

</mosaic_0001>

<bundles_post_ra>
// kernel: tpu_custom_call.1
= control target key start
LH: loop header
LB: loop body
LE: loop exit
PB: predicated region body
PF: predicated region fallthrough
CT: control target
= control target key end

     0   :  { %10 = vsyncpa [#allocation3], 0  ;;  %s732_s0 = inlined_call_operand.hbm [shape: f32[8,32], index: 0, kind: input, shape index: {}, may-alias: {0,5}]   ;;  %s733_s1 = inlined_call_operand.hbm [shape: f32[8,48], index: 1, kind: input, shape index: {}]   ;;  %s734_s2 = inlined_call_operand.hbm [shape: f32[32,64], index: 2, kind: input, shape index: {}]   ;;  %s735_s3 = inlined_call_operand.hbm [shape: f32[48,96], index: 3, kind: input, shape index: {}]   ;;  %s736_s4 = inlined_call_operand.hbm [shape: f32[32,32], index: 4, kind: input, shape index: {}]   ;;  %s737_s5 = inlined_call_operand.hbm [shape: f32[8,32], index: 5, kind: output, shape index: {}, may-alias: {0,5}]  }
   0x1   :  { %11 = vsyncpa [#allocation6], 0 }
   0x2   :  { %12 = vsyncpa [#allocation9], 0 }
   0x3   :  { %13 = vsyncpa [#allocation4], 0  ;;  %s601_s18 = smov [#allocation5]   ;;  %s461_s22 = scalar_lea.hbm %s733_s1, 128 }
   0x4   :  { %s30_s19 = sshll.u32 %s601_s18, 4  ;;  %p462_p0 = scmp.ne.s32.totalorder %s733_s1, %s461_s22  ;;  %s31_s19 = int_to_ptr.vmem [resolvable:$true] %s30_s19 }
   0x5   :  { %p465_p1 = scmp.lt.u32.totalorder %s461_s22, %s733_s1 }
   0x7   :  { %p467_p2 = pnand %p465_p1, %p462_p0 }
   0x9   :  { %470 = shalt.err (!%p467_p2)
}
   0xa   :  { %s471_s27 = scalar_lea.vmem %s31_s19, 128  ;;  %p476_p4 = scmp.lt.s32.totalorder %s31_s19, %s31_s19 }
   0xb   :  { %p472_p3 = scmp.ne.s32.totalorder %s31_s19, %s471_s27  ;;  %p477_p5 = scmp.lt.s32.totalorder %s471_s27, %s471_s27 }
   0xd   :  { %p478_p6 = por %p477_p5, %p476_p4 }
   0xf   :  { %p479_p7 = pnand %p478_p6, %p472_p3 }
  0x11   :  { %482 = shalt.err (!%p479_p7)
}
  0x12   :  { %33 = dma.hbm_to_vmem [thread:$0]  %s733_s1, 128, %s31_s19, [#allocation6]  }
  0x13   :  { %s602_s30 = smov [#allocation8]   ;;  %s603_s7 = smov [#allocation2]  }
  0x14   :  { %s51_s6 = sshll.u32 %s602_s30, 4  ;;  %s20_s8 = sshll.u32 %s603_s7, 4  ;;  %s52_s6 = int_to_ptr.vmem [resolvable:$true] %s51_s6  ;;  %s21_s8 = int_to_ptr.vmem [resolvable:$true] %s20_s8 }
  0x15   :  { %s483_s11 = scalar_lea.hbm %s735_s3, 768 }
  0x16   :  { %p484_p8 = scmp.ne.s32.totalorder %s735_s3, %s483_s11  ;;  %p487_p9 = scmp.lt.u32.totalorder %s483_s11, %s735_s3 }
  0x18   :  { %p489_p10 = pnand %p487_p9, %p484_p8 }
  0x1a   :  { %492 = shalt.err (!%p489_p10)
}
  0x1b   :  { %s493_s1 = scalar_lea.vmem %s52_s6, 768  ;;  %p498_p12 = scmp.lt.s32.totalorder %s52_s6, %s52_s6 }
  0x1c   :  { %p494_p11 = scmp.ne.s32.totalorder %s52_s6, %s493_s1  ;;  %p499_p13 = scmp.lt.s32.totalorder %s493_s1, %s493_s1 }
  0x1e   :  { %p500_p0 = por %p499_p13, %p498_p12 }
  0x20   :  { %p501_p1 = pnand %p500_p0, %p494_p11 }
  0x22   :  { %504 = shalt.err (!%p501_p1)
}
  0x23   :  { %s604_s16 = smov 128   ;;  %s605_s17 = smov 8  }
  0x24   :  { %57 = dma.hbm_to_vmem [thread:$0]  %s735_s3, 768, %s52_s6, [#allocation9], %s604_s16, %s604_s16, %s605_s17  }
  0x25   :  { %s505_s22 = scalar_lea.hbm %s732_s0, 128 }
  0x26   :  { %p506_p2 = scmp.ne.s32.totalorder %s732_s0, %s505_s22  ;;  %p509_p3 = scmp.lt.u32.totalorder %s505_s22, %s732_s0 }
  0x28   :  { %p511_p4 = pnand %p509_p3, %p506_p2 }
  0x2a   :  { %514 = shalt.err (!%p511_p4)
}
  0x2b   :  { %s515_s27 = scalar_lea.vmem %s21_s8, 128  ;;  %p520_p6 = scmp.lt.s32.totalorder %s21_s8, %s21_s8 }
  0x2c   :  { %p516_p5 = scmp.ne.s32.totalorder %s21_s8, %s515_s27  ;;  %p521_p7 = scmp.lt.s32.totalorder %s515_s27, %s515_s27 }
  0x2e   :  { %p522_p8 = por %p521_p7, %p520_p6 }
  0x30   :  { %p523_p9 = pnand %p522_p8, %p516_p5 }
  0x32   :  { %526 = shalt.err (!%p523_p9)
}
  0x33   :  { %23 = dma.hbm_to_vmem [thread:$0]  %s732_s0, 128, %s21_s8, [#allocation3]  }
  0x34   :  { %s606_s29 = smov [#allocation7]   ;;  %s607_s6 = smov [#allocation10]  }
  0x35   :  { %s39_s30 = sshll.u32 %s606_s29, 4  ;;  %s63_s7 = sshll.u32 %s607_s6, 4  ;;  %s40_s30 = int_to_ptr.vmem [resolvable:$true] %s39_s30  ;;  %s64_s7 = int_to_ptr.vmem [resolvable:$true] %s63_s7 }
  0x36   :  { %s527_s11 = scalar_lea.hbm %s734_s2, 512 }
  0x37   :  { %p528_p10 = scmp.ne.s32.totalorder %s734_s2, %s527_s11  ;;  %p531_p11 = scmp.lt.u32.totalorder %s527_s11, %s734_s2 }
  0x39   :  { %p533_p12 = pnand %p531_p11, %p528_p10 }
  0x3b   :  { %536 = shalt.err (!%p533_p12)
}
  0x3c   :  { %s537_s0 = scalar_lea.vmem %s40_s30, 512  ;;  %p542_p0 = scmp.lt.s32.totalorder %s40_s30, %s40_s30 }
  0x3d   :  { %p538_p13 = scmp.ne.s32.totalorder %s40_s30, %s537_s0  ;;  %p543_p1 = scmp.lt.s32.totalorder %s537_s0, %s537_s0 }
  0x3f   :  { %p544_p2 = por %p543_p1, %p542_p0 }
  0x41   :  { %p545_p3 = pnand %p544_p2, %p538_p13 }
  0x43   :  { %548 = shalt.err (!%p545_p3)
}
  0x44   :  { %45 = dma.hbm_to_vmem [thread:$0]  %s734_s2, 512, %s40_s30, [#allocation6], %s604_s16, %s604_s16, %s605_s17  }
  0x45   :  { %s549_s20 = scalar_lea.hbm %s736_s4, 512 }
  0x46   :  { %p550_p4 = scmp.ne.s32.totalorder %s736_s4, %s549_s20  ;;  %p553_p5 = scmp.lt.u32.totalorder %s549_s20, %s736_s4 }
  0x48   :  { %p555_p6 = pnand %p553_p5, %p550_p4 }
  0x4a   :  { %558 = shalt.err (!%p555_p6)
}
  0x4b   :  { %s559_s25 = scalar_lea.vmem %s64_s7, 512  ;;  %p564_p8 = scmp.lt.s32.totalorder %s64_s7, %s64_s7 }
  0x4c   :  { %p560_p7 = scmp.ne.s32.totalorder %s64_s7, %s559_s25  ;;  %p565_p9 = scmp.lt.s32.totalorder %s559_s25, %s559_s25 }
  0x4e   :  { %p566_p10 = por %p565_p9, %p564_p8 }
  0x50   :  { %p567_p11 = pnand %p566_p10, %p560_p7 }
  0x52   :  { %570 = shalt.err (!%p567_p11)
}
  0x53   :  { %69 = dma.hbm_to_vmem [thread:$0]  %s736_s4, 512, %s64_s7, [#allocation9], %s604_s16, %s604_s16, %s605_s17  }
  0x54   :  { %593 = dma.done.wait [#allocation3], 128  }
  0x55   :  { %594 = vsyncadd [#allocation3], 4294967168 }
  0x56   :  { %595 = dma.done.wait [#allocation6], 640  }
  0x57   :  { %596 = vsyncadd [#allocation6], 4294966656 }
  0x58   :  { %597 = dma.done.wait [#allocation9], 1280  }
  0x59   :  { %598 = vsyncadd [#allocation9], 4294966016  ;;  %v608_v0 = vmov 0.0|0.0   ;;  %vm609_vm0 = vmmov 0   ;;  %v610_v1 = vmov 0.0   ;;  %v87_v2 = vld [vmem:[#allocation8] sm:$0xff] }
  0x5a   :  { %420 = vmatprep.subr.bf16.mxu0 %v608_v0  ;;  %429 = vmatprep.subr.bf16.mxu1 %v608_v0  ;;  %v88_v3 = vld [vmem:[#allocation8 + $0x8] sm:$0xff]  ;;  %v167_v4 = vld [vmem:[#allocation7] sm:$0xff]  ;;  %v89_v7 = vld [vmem:[#allocation8 + $0x10] sm:$0xff]  ;;  %s611_s4 = smov 32   ;;  %vm171_vm1 = vcmask 261120   ;;  %vm93_vm2 = vcmask 392192  }
  0x5b   :  { %406 = vmatprep.mubr.msk.f32.mxu1 %vm609_vm0, %v610_v1  ;;  %395 = vmatprep.mubr.msk.f32.mxu0 %vm609_vm0, %v610_v1  ;;  %v421_v5 = vpack.c.bf16 %v88_v3, %v87_v2  ;;  %v168_v6 = vld [vmem:[#allocation7 + $0x8] sm:$0xff]  ;;  %v90_v8 = vld [vmem:[#allocation8 + $0x18] sm:$0xff]  ;;  %v169_v10 = vld [vmem:[#allocation7 + $0x10] sm:$0xff]  ;;  %s612_s16 = smov 64   ;;  %s613_s17 = smov 96  }
  0x5c   :  { %v430_v9 = vpack.c.bf16 %v168_v6, %v167_v4  ;;  %v170_v11 = vld [vmem:[#allocation7 + $0x18] sm:$0xff]  ;;  %v424_v12 = vpack.c.bf16 %v90_v8, %v89_v7  ;;  %v91_v14 = vld [vmem:[#allocation8 + $0x20] sm:$0xff]  ;;  %v92_v15 = vld [vmem:[#allocation8 + $0x28] sm:$0xff]  ;;  %s614_s27 = smov [#allocation11]  }
  0x5d   :  { %422 = vmatpush3.bf16.msra.mxu0 %v421_v5  ;;  %v433_v13 = vpack.c.bf16 %v170_v11, %v169_v10  ;;  %v85_v16 = vld [vmem:[#allocation2] sm:$0xff]  ;;  %v427_v17 = vpack.c.bf16 %v92_v15, %v91_v14  ;;  %v86_v18 = vld [vmem:[#allocation5] sm:$0xff]  ;;  %v258_v21 = vld [vmem:[#allocation10 + $0x10] sm:$0xff]  ;;  %s351_s3 = sshll.u32 %s614_s27, 4  ;;  %s352_s3 = int_to_ptr.vmem [resolvable:$true] %s351_s3 }
  0x5e   :  { %423 = vmatprep.subr.bf16.mxu0 %v608_v0  ;;  %431 = vmatpush3.bf16.msra.mxu1 %v430_v9  ;;  %v256_v19 = vld [vmem:[#allocation10] sm:$0xff]  ;;  %v257_v20 = vld [vmem:[#allocation10 + $0x8] sm:$0xff]  ;;  %v259_v23 = vld [vmem:[#allocation10 + $0x18] sm:$0xff]  ;;  %s571_s28 = scalar_lea.vmem %s352_s3, 128  ;;  %p576_p13 = scmp.lt.s32.totalorder %s352_s3, %s352_s3 }
  0x5f   :  { %432 = vmatprep.subr.bf16.mxu1 %v608_v0  ;;  %252 = vrot.lane.b32.xlu0 %v85_v16, %s611_s4  ;;  %v436_v22 = vpack.c.bf16 %v257_v20, %v256_v19  ;;  %v439_v24 = vpack.c.bf16 %v259_v23, %v258_v21  ;;  %p572_p12 = scmp.ne.s32.totalorder %s352_s3, %s571_s28  ;;  %p577_p0 = scmp.lt.s32.totalorder %s571_s28, %s571_s28 }
  0x61   :  { %425 = vmatpush3.bf16.msra.mxu0 %v424_v12  ;;  %p578_p1 = por %p577_p0, %p576_p13 }
  0x62   :  { %426 = vmatprep.subr.bf16.mxu0 %v608_v0  ;;  %434 = vmatpush3.bf16.msra.mxu1 %v433_v13 }
  0x63   :  { %435 = vmatprep.subr.bf16.mxu1 %v608_v0  ;;  %p579_p2 = pnand %p578_p1, %p572_p12 }
  0x65   :  { %428 = vmatpush3.bf16.msra.mxu0 %v427_v17  ;;  %407 = vmatmul.mubr.msk.f32.vlgmr.msra.gmra.mrb[0].mxu1 %vm171_vm1, %v85_v16 }
  0x66   :  { %417 = vmatprep.mubr.msk.f32.mxu1 %vm609_vm0, %v610_v1  ;;  %437 = vmatpush3.bf16.msra.mxu1 %v436_v22 }
  0x67   :  { %438 = vmatprep.subr.bf16.mxu1 %v608_v0 }
  0x68   :  { %396 = vmatmul.mubr.msk.f32.vlgmr.msra.gmra.mrb[0].mxu0 %vm93_vm2, %v86_v18 }
  0x6a   :  { %440 = vmatpush3.bf16.msra.mxu1 %v439_v24 }
  0xd1   :  { %v253_v33 = vpop.permute.xlu0 %252 }
 0x138   :  { %v241_v25 = vpop.f32.mrb[0].mxu1 }
 0x139   :  { %v408_v26 = vpop.f32.mrb[1].mxu1 }
 0x13b   :  { %v163_v27 = vpop.f32.mrb[0].mxu0 }
 0x13c   :  { %v245_v28 = vadd.f32 %v241_v25, %v163_v27  ;;  %264 = vrot.lane.b32.xlu1 %v163_v27, %s612_s16  ;;  %v397_v29 = vpop.f32.mrb[1].mxu0 }
 0x13e   :  { %v364_v30 = vmul.f32 -1.442695, %v245_v28 }
 0x140   :  { %455 = vpow2.f32 %v364_v30 }
 0x14a   :  { %v456_v31 = vpop.eup %455 }
 0x14b   :  { %v249_v32 = vadd.f32 1.0, %v456_v31 }
 0x14d   :  { %457 = vrcp.f32 %v249_v32 }
 0x157   :  { %v458_v34 = vpop.eup %457 }
 0x158   :  { %v255_v35 = vmul.f32 %v458_v34, %v253_v33  ;;  %v340_v41 = vsub.f32 1.0, %v458_v34 }
 0x15a   :  { %261 = vrot.lane.b32.xlu0 %v255_v35, %s613_s17  ;;  %v341_v43 = vmul.f32 %v340_v41, %v85_v16 }
 0x1ae   :  { %v265_v37 = vpop.permute.xlu1 %264 }
 0x1cc   :  { %v262_v36 = vpop.permute.xlu0 %261 }
 0x1cd   :  { %418 = vmatmul.mubr.msk.f32.vlgmr.msra.gmra.mrb[2].mxu1 %vm171_vm1, %v262_v36 }
 0x2a0   :  { %v335_v38 = vpop.f32.mrb[2].mxu1 }
 0x2a1   :  { %v336_v39 = vadd.f32 %v335_v38, %v265_v37  ;;  %v419_v40 = vpop.f32.mrb[3].mxu1 }
 0x2a3   :  { %459 = vtanh.f32 %v336_v39 }
 0x2ad   :  { %v460_v42 = vpop.eup %459 }
 0x2ae   :  { %v342_v44 = vmul.f32 %v460_v42, %v458_v34 }
 0x2b0   :  { %v343_v45 = vadd.f32 %v342_v44, %v341_v43 }
 0x2b2   :  { %344 = vst.msk [vmem:[#allocation11] sm:$0xff] %vm171_vm1, %v343_v45 }
 0x2b3   :  { %582 = shalt.err (!%p579_p2)
}
 0x2b4   :  { %s583_s6 = scalar_lea.hbm %s737_s5, 128 }
 0x2b5   :  { %p584_p3 = scmp.ne.s32.totalorder %s737_s5, %s583_s6  ;;  %p587_p4 = scmp.lt.u32.totalorder %s583_s6, %s737_s5 }
 0x2b7   :  { %p589_p5 = pnand %p587_p4, %p584_p3 }
 0x2b9   :  { %592 = shalt.err (!%p589_p5)
}
 0x2ba   :  { %354 = dma.vmem_to_hbm [thread:$0]  %s352_s3, 128, %s737_s5, [#allocation4]  }
 0x2bb   :  { %599 = dma.done.wait [#allocation4], 128  }
 0x2bc   :  { %600 = vsyncadd [#allocation4], 4294967168 }
 0x2bd   :  { %358 = vsyncpa [#allocation3], 1 }
 0x2be   :  { %359 = vsyncpa [#allocation6], 1 }
 0x2bf   :  { %360 = vsyncpa [#allocation9], 1 }
 0x2c0   :  { %361 = vsyncpa [#allocation4], 1 }

</bundles_post_ra>
